<compile_context>
chip_gen: v6e
topology: v6e:2x2x1
jax: 0.10.0
libtpu: 0.0.40
codegen_flags: <defaults>
</compile_context>

<pallas_src>
import functools

import jax
import jax.numpy as jnp
from jax import lax
from jax.experimental import pallas as pl
from jax.experimental.pallas import tpu as pltpu

_LANE = 256  # lane multiple: fills the 256-wide MXU on v6e/v7x, still 128-aligned for v5e.


# ----------------------------- Pallas kernels -----------------------------

def _stats_kernel(x_ref, gram_ref, xsum_ref):
    """Accumulate X @ X^T and sum(x) over the (n, hw-tile) reduction axes.

    x_ref:    (1, C, T)  input tile, native dtype (bf16 streams at full MXU rate)
    gram_ref: (1, C, C)  f32 accumulator slab (VMEM-resident per "core")
    xsum_ref: (1, C, 1)  f32 accumulator slab
    """
    @pl.when((pl.program_id(1) == 0) & (pl.program_id(2) == 0))
    def _():
        gram_ref[...] = jnp.zeros_like(gram_ref)
        xsum_ref[...] = jnp.zeros_like(xsum_ref)

    x = x_ref[0]                                           # (C, T), native dtype
    # X @ X^T without transposing the streamed operand: contract both on the lane axis.
    gram_ref[0] += lax.dot_general(
        x, x, (((1,), (1,)), ((), ())), preferred_element_type=jnp.float32)
    xsum_ref[0] += jnp.sum(x, axis=1, keepdims=True, dtype=jnp.float32)


def _apply_kernel(x_ref, wm_ref, b_ref, out_ref):
    """out = wm_eff @ x + b_eff  (whitening + centering + affine, fused).

    x_ref:   (1, C, T)  native dtype
    wm_ref:  (C, C)     block-diagonal whitening matrix (x.dtype), affine scale folded in
    b_ref:   (C, 1)     f32 bias already adjusted by -wm_eff @ mean
    out_ref: (1, C, T)
    """
    y = jnp.dot(wm_ref[...], x_ref[0], preferred_element_type=jnp.float32)
    out_ref[0] = (y + b_ref[...]).astype(out_ref.dtype)


# ----------------------------- tiling / VMEM helpers -----------------------------

def _round_up(x: int, mult: int) -> int:
    return ((x + mult - 1) // mult) * mult


@functools.lru_cache(maxsize=1)
def _vmem_capacity_bytes() -> int:
    try:
        return int(pltpu.get_tpu_info().vmem_capacity_bytes)
    except Exception:
        return 64 * 1024 * 1024  # conservative: v7x-class per-core VMEM


def _pick_hw_tile(hw: int, c: int, itemsize: int, max_block_bytes: int) -> int:
    """Lane-dense tile: multiple of 256 lanes, ~max_block_bytes per (C, tile) block,
    >= 512 lanes when the (padded) spatial extent allows it, and chosen so that
    padding hw up to a tile multiple wastes at most ~one lane-group per tile."""
    hw_up = _round_up(max(hw, 1), _LANE)
    by_bytes = (max_block_bytes // max(1, c * itemsize)) // _LANE * _LANE
    tile_max = min(hw_up, max(by_bytes, min(512, hw_up), _LANE))
    n_tiles = -(-hw_up // tile_max)
    tile = _round_up(-(-hw_up // n_tiles), _LANE)
    return tile


# ----------------------------- forward wrapper -----------------------------

@functools.partial(jax.jit, static_argnames=("num_channels", "t", "eps"))
def iternorm_sigma_forward(x, weight, bias, *, num_channels, t, eps):
    """Training-mode IterNormSigma forward.  x: (N, C, H, W) NCHW."""
    N, C, H, W = x.shape
    hw = H * W
    m = N * hw                                             # true sample count (no padding)
    itemsize = x.dtype.itemsize

    # ---- generation-aware VMEM / tile budget ----
    vmem_cap = _vmem_capacity_bytes()
    vmem_limit = min(int(vmem_cap * 0.75), 100 * 1024 * 1024)
    fixed = 6 * (C * C + C) * 4                            # wm / gram slabs / bias + slack
    max_block_bytes = max(512 * 1024, min(8 * 1024 * 1024, (vmem_limit - fixed) // 5))
    tile = _pick_hw_tile(hw, C, itemsize, max_block_bytes)

    hw_pad = _round_up(hw, tile)
    x3 = x.reshape(N, C, hw)                               # free reshape, no transpose
    if hw_pad != hw:
        # zero columns contribute nothing to gram / sum; padded outputs are sliced away
        x3 = jnp.pad(x3, ((0, 0), (0, 0), (0, hw_pad - hw)))
    hw_tiles = hw_pad // tile
    x_bytes = N * C * hw_pad * itemsize

    # ---- pass 1: streaming statistics, split across TensorCores when possible ----
    if N % 2 == 0:
        ncs, n_per, h_per = 2, N // 2, hw_tiles
        x_map = lambda c, n, h: (c * n_per + n, 0, h)
    elif hw_tiles % 2 == 0:
        ncs, n_per, h_per = 2, N, hw_tiles // 2
        x_map = lambda c, n, h: (n, 0, c * h_per + h)
    else:
        ncs, n_per, h_per = 1, N, hw_tiles
        x_map = lambda c, n, h: (n, 0, h)

    stats_cost = pl.CostEstimate(
        flops=2 * C * C * N * hw_pad + 2 * C * N * hw_pad,
        transcendentals=0,
        bytes_accessed=x_bytes + ncs * (C * C + C) * 4)

    gram_slabs, xsum_slabs = pl.pallas_call(
        _stats_kernel,
        out_shape=(jax.ShapeDtypeStruct((ncs, C, C), jnp.float32),
                   jax.ShapeDtypeStruct((ncs, C, 1), jnp.float32)),
        grid=(ncs, n_per, h_per),
        in_specs=[pl.BlockSpec((1, C, tile), x_map)],
        out_specs=(pl.BlockSpec((1, C, C), lambda c, n, h: (c, 0, 0)),
                   pl.BlockSpec((1, C, 1), lambda c, n, h: (c, 0, 0))),
        compiler_params=pltpu.CompilerParams(
            dimension_semantics=("parallel", "arbitrary", "arbitrary"),
            vmem_limit_bytes=vmem_limit),
        cost_estimate=stats_cost,
    )(x3)

    gram = jnp.sum(gram_slabs, axis=0)                     # (C, C)
    mean = jnp.sum(xsum_slabs, axis=0) / m                 # (C, 1)

    # ---- phase boundary: batched per-group Newton-Schulz ----
    G = (C - 1) // num_channels + 1
    d = num_channels if G > 1 else C
    C_pad = G * d
    pad_c = C_pad - C

    gram_p = jnp.pad(gram, ((0, pad_c), (0, pad_c)))
    mean_p = jnp.pad(mean, ((0, pad_c), (0, 0)))

    eye_g = jnp.eye(G, dtype=jnp.float32)
    eye_d = jnp.eye(d, dtype=jnp.float32)
    # gather the per-group diagonal (d x d) blocks -> (G, d, d)
    gram_blk = jnp.einsum("gihj,gh->gij", gram_p.reshape(G, d, G, d), eye_g)
    mean_blk = mean_p.reshape(G, d, 1)
    valid = (jnp.arange(C_pad) < C).astype(jnp.float32).reshape(G, d)
    diag_mask = valid[:, :, None] * eye_d[None]            # eps only on real channels

    # sigma_g = eps*I + X_g X_g^T/m - mu_g mu_g^T  (padded rows/cols are exactly zero)
    sigma = gram_blk / m - mean_blk * jnp.swapaxes(mean_blk, 1, 2) + eps * diag_mask
    trace = jnp.trace(sigma, axis1=1, axis2=2)             # (G,)
    r = 1.0 / trace
    sn = sigma * r[:, None, None]

    p = jnp.broadcast_to(eye_d, (G, d, d))
    for _ in range(t):                                     # t batched Newton-Schulz steps
        p = 1.5 * p - 0.5 * (p @ p @ p @ sn)
    wm_blk = p * jnp.sqrt(r)[:, None, None]                # (G, d, d)

    # assemble the block-diagonal whitening matrix and drop padded channels
    wm = (wm_blk[:, :, None, :] * eye_g[:, None, :, None]).reshape(C_pad, C_pad)[:C, :C]

    w_col = weight.reshape(C, 1).astype(jnp.float32)
    b_col = bias.reshape(C, 1).astype(jnp.float32)
    wm_eff = w_col * wm                                    # fold affine scale into wm
    b_eff = b_col - wm_eff @ mean                          # fold centering + affine bias
    wm_in = wm_eff.astype(x.dtype)                         # native-dtype MXU matmul in pass 2

    # ---- pass 2: streaming whitening + affine ----
    apply_cost = pl.CostEstimate(
        flops=2 * C * C * N * hw_pad + C * N * hw_pad,
        transcendentals=0,
        bytes_accessed=2 * x_bytes + C * C * itemsize + C * 4)

    out3 = pl.pallas_call(
        _apply_kernel,
        out_shape=jax.ShapeDtypeStruct((N, C, hw_pad), x.dtype),
        grid=(N, hw_tiles),
        in_specs=[pl.BlockSpec((1, C, tile), lambda n, h: (n, 0, h)),
                  pl.BlockSpec((C, C), lambda n, h: (0, 0)),
                  pl.BlockSpec((C, 1), lambda n, h: (0, 0))],
        out_specs=pl.BlockSpec((1, C, tile), lambda n, h: (n, 0, h)),
        compiler_params=pltpu.CompilerParams(
            dimension_semantics=("parallel", "parallel"),
            vmem_limit_bytes=vmem_limit),
        cost_estimate=apply_cost,
    )(x3, wm_in, b_eff)

    return out3[:, :, :hw].reshape(N, C, H, W)


class IterNormSigmaPallas:
    """JAX/Pallas port of IterNormSigma (training-mode forward)."""

    def __init__(self, num_features, num_channels, t=5, eps=1e-5, momentum=0.1,
                 affine=True, dim=4):
        self.t = t
        self.eps = eps
        self.momentum = momentum
        self.num_features = num_features
        self.num_channels = num_channels
        self.num_groups = (num_features - 1) // num_channels + 1
        self.affine = affine
        # deterministic parameter init (matches reset_parameters: ones / zeros)
        self.weight = jnp.ones((num_features,), jnp.float32)
        self.bias = jnp.zeros((num_features,), jnp.float32)

    def __call__(self, x):
        if self.affine:
            w, b = self.weight, self.bias
        else:
            w = jnp.ones((self.num_features,), jnp.float32)
            b = jnp.zeros((self.num_features,), jnp.float32)
        return iternorm_sigma_forward(x, w, b, num_channels=self.num_channels,
                                      t=self.t, eps=self.eps)


# ---------------- pure-JAX reference (centered per-group form) ----------------
def _ref_module(x, num_channels, t, eps):
    N, C, H, W = x.shape
    outs = []
    lo = 0
    while lo < C:
        hi = min(lo + num_channels, C)
        cg = hi - lo
        xg = jnp.transpose(x[:, lo:hi], (1, 0, 2, 3)).reshape(cg, -1)
        m = xg.shape[1]
        mean = xg.mean(axis=1, keepdims=True)
        xc = xg - mean
        sigma = eps * jnp.eye(cg) + (xc @ xc.T) / m
        rtr = 1.0 / jnp.trace(sigma)
        sn = sigma * rtr
        p = jnp.eye(cg)
        for _ in range(t):
            p = 1.5 * p - 0.5 * (p @ p @ p @ sn)
        wm = p * jnp.sqrt(rtr)
        xn = wm @ xc
        outs.append(jnp.transpose(xn.reshape(cg, N, H, W), (1, 0, 2, 3)))
        lo = hi
    # affine is identity (weight=1, bias=0)
    return jnp.concatenate(outs, axis=1)


if __name__ == "__main__":
    t, eps = 5, 1e-5
    key = jax.random.PRNGKey(0)

    # --- f32 path: C=12 -> groups [0:8] and [8:12] (exercises last-group padding) ---
    N, C, H, W = 2, 12, 16, 16
    num_channels = 8
    x = jax.random.normal(key, (N, C, H, W), dtype=jnp.float32) * 2.0 + 0.5
    module = IterNormSigmaPallas(num_features=C, num_channels=num_channels, t=t, eps=eps)
    out = jax.block_until_ready(module(x))
    ref = jax.block_until_ready(_ref_module(x, num_channels, t, eps))
    assert out.shape == (N, C, H, W), out.shape
    max_err = float(jnp.max(jnp.abs(out - ref)))
    assert max_err < 2e-3, max_err

    # --- bf16 path: native-dtype streaming into the MXU (loose tolerance) ---
    Nb, Cb = 2, 16
    xb32 = jax.random.normal(jax.random.PRNGKey(1), (Nb, Cb, H, W), jnp.float32) * 2.0 + 0.5
    xb = xb32.astype(jnp.bfloat16)
    module_b = IterNormSigmaPallas(num_features=Cb, num_channels=8, t=t, eps=eps)
    outb = jax.block_until_ready(module_b(xb))
    refb = jax.block_until_ready(_ref_module(xb32, 8, t, eps))
    assert outb.shape == (Nb, Cb, H, W) and outb.dtype == jnp.bfloat16
    outb32 = outb.astype(jnp.float32)
    assert bool(jnp.all(jnp.isfinite(outb32)))
    assert float(jnp.max(jnp.abs(outb32 - refb))) < 0.5

    print("KERNEL_OK")
</pallas_src>

<mosaic_0001>
module attributes {stable_mosaic.version = 11 : i64} {
  func.func @_stats_kernel(%arg0: i32, %arg1: i32, %arg2: i32, %arg3: memref<1x12x256xf32, #tpu.memory_space<vmem>>, %arg4: memref<1x12x12xf32, #tpu.memory_space<vmem>>, %arg5: memref<1x12x1xf32, #tpu.memory_space<vmem>>) attributes {dimension_semantics = [#tpu.dimension_semantics<parallel>, #tpu.dimension_semantics<arbitrary>, #tpu.dimension_semantics<arbitrary>], iteration_bounds = array<i64: 2, 1, 1>, scalar_prefetch = 0 : i64, scratch_operands = 0 : i64, tpu.core_type = #tpu.core_type<tc>, window_params = [{transform_indices = @transform_0, window_bounds = array<i64: 1, 12, 256>}, {transform_indices = @transform_1, window_bounds = array<i64: 1, 12, 12>}, {transform_indices = @transform_2, window_bounds = array<i64: 1, 12, 1>}]} {
    %c0_i32 = arith.constant 0 : i32
    %0 = arith.cmpi eq, %arg1, %c0_i32 : i32
    %c0_i32_0 = arith.constant 0 : i32
    %1 = arith.cmpi eq, %arg2, %c0_i32_0 : i32
    %2 = arith.andi %0, %1 : i1
    %3 = arith.extui %2 : i1 to i32
    %c0_i32_1 = arith.constant 0 : i32
    %4 = arith.cmpi ne, %3, %c0_i32_1 : i32
    scf.if %4 {
      %cst_17 = arith.constant 0.000000e+00 : f32
      %22 = vector.broadcast %cst_17 : f32 to vector<1x12x12xf32>
      %c0_18 = arith.constant 0 : index
      %c0_19 = arith.constant 0 : index
      %c0_20 = arith.constant 0 : index
      %23 = vector.load %arg4[%c0_18, %c0_19, %c0_20] : memref<1x12x12xf32, #tpu.memory_space<vmem>>, vector<1x12x12xf32>
      tpu.vector_store %arg4[%c0_18, %c0_19, %c0_20], %22 {strides = array<i32>} : memref<1x12x12xf32, #tpu.memory_space<vmem>>, vector<1x12x12xf32>,
      %cst_21 = arith.constant 0.000000e+00 : f32
      %24 = vector.broadcast %cst_21 : f32 to vector<1x12x1xf32>
      %c0_22 = arith.constant 0 : index
      %c0_23 = arith.constant 0 : index
      %c0_24 = arith.constant 0 : index
      %25 = vector.load %arg5[%c0_22, %c0_23, %c0_24] : memref<1x12x1xf32, #tpu.memory_space<vmem>>, vector<1x12x1xf32>
      tpu.vector_store %arg5[%c0_22, %c0_23, %c0_24], %24 {strides = array<i32>} : memref<1x12x1xf32, #tpu.memory_space<vmem>>, vector<1x12x1xf32>,
    } else {
    }
    %c0 = arith.constant 0 : index
    %c0_2 = arith.constant 0 : index
    %c0_3 = arith.constant 0 : index
    %5 = vector.load %arg3[%c0, %c0_2, %c0_3] : memref<1x12x256xf32, #tpu.memory_space<vmem>>, vector<1x12x256xf32>
    %6 = vector.shape_cast %5 : vector<1x12x256xf32> to vector<12x256xf32>
    %c0_4 = arith.constant 0 : index
    %c0_5 = arith.constant 0 : index
    %c0_6 = arith.constant 0 : index
    %7 = vector.load %arg4[%c0_4, %c0_5, %c0_6] : memref<1x12x12xf32, #tpu.memory_space<vmem>>, vector<1x12x12xf32>
    %8 = vector.shape_cast %7 : vector<1x12x12xf32> to vector<12x12xf32>
    %cst = arith.constant dense<0.000000e+00> : vector<12x12xf32>
    %9 = tpu.matmul %6, %6, %cst {dimension_numbers = #tpu.dot_dimension_numbers<[1], [1], [0], [0], [0, 0, 1, 0], [], []>} : vector<12x256xf32>, vector<12x256xf32>, vector<12x12xf32> -> vector<12x12xf32>
    %10 = arith.addf %8, %9 : vector<12x12xf32>
    %c0_7 = arith.constant 0 : index
    %c0_8 = arith.constant 0 : index
    %c0_9 = arith.constant 0 : index
    %11 = vector.load %arg4[%c0_7, %c0_8, %c0_9] : memref<1x12x12xf32, #tpu.memory_space<vmem>>, vector<1x12x12xf32>
    %12 = vector.shape_cast %11 : vector<1x12x12xf32> to vector<12x12xf32>
    %13 = vector.shape_cast %10 : vector<12x12xf32> to vector<1x12x12xf32>
    tpu.vector_store %arg4[%c0_7, %c0_8, %c0_9], %13 {strides = array<i32>} : memref<1x12x12xf32, #tpu.memory_space<vmem>>, vector<1x12x12xf32>,
    %c0_10 = arith.constant 0 : index
    %c0_11 = arith.constant 0 : index
    %c0_12 = arith.constant 0 : index
    %14 = vector.load %arg5[%c0_10, %c0_11, %c0_12] : memref<1x12x1xf32, #tpu.memory_space<vmem>>, vector<1x12x1xf32>
    %15 = vector.shape_cast %14 : vector<1x12x1xf32> to vector<12x1xf32>
    %cst_13 = arith.constant dense<0.000000e+00> : vector<12xf32>
    %16 = vector.multi_reduction <add>, %6, %cst_13 [1] : vector<12x256xf32> to vector<12xf32>
    %17 = vector.shape_cast %16 : vector<12xf32> to vector<12x1xf32>
    %18 = arith.addf %15, %17 : vector<12x1xf32>
    %c0_14 = arith.constant 0 : index
    %c0_15 = arith.constant 0 : index
    %c0_16 = arith.constant 0 : index
    %19 = vector.load %arg5[%c0_14, %c0_15, %c0_16] : memref<1x12x1xf32, #tpu.memory_space<vmem>>, vector<1x12x1xf32>
    %20 = vector.shape_cast %19 : vector<1x12x1xf32> to vector<12x1xf32>
    %21 = vector.shape_cast %18 : vector<12x1xf32> to vector<1x12x1xf32>
    tpu.vector_store %arg5[%c0_14, %c0_15, %c0_16], %21 {strides = array<i32>} : memref<1x12x1xf32, #tpu.memory_space<vmem>>, vector<1x12x1xf32>,
    return
  }
  func.func @transform_0(%arg0: i32, %arg1: i32, %arg2: i32) -> (i32, i32, i32) {
    %c1_i32 = arith.constant 1 : i32
    %0 = arith.muli %arg0, %c1_i32 : i32
    %1 = arith.addi %0, %arg1 : i32
    %c0_i32 = arith.constant 0 : i32
    %c0_i32_0 = arith.constant 0 : i32
    return %1, %c0_i32, %arg2 : i32, i32, i32
  }
  func.func @transform_1(%arg0: i32, %arg1: i32, %arg2: i32) -> (i32, i32, i32) {
    %c0_i32 = arith.constant 0 : i32
    %c0_i32_0 = arith.constant 0 : i32
    %c0_i32_1 = arith.constant 0 : i32
    return %arg0, %c0_i32, %c0_i32_0 : i32, i32, i32
  }
  func.func @transform_2(%arg0: i32, %arg1: i32, %arg2: i32) -> (i32, i32, i32) {
    %c0_i32 = arith.constant 0 : i32
    %c0_i32_0 = arith.constant 0 : i32
    %c0_i32_1 = arith.constant 0 : i32
    return %arg0, %c0_i32, %c0_i32_0 : i32, i32, i32
  }
}

module attributes {stable_mosaic.version = 11 : i64} {
  func.func @_apply_kernel(%arg0: i32, %arg1: i32, %arg2: memref<1x12x256xf32, #tpu.memory_space<vmem>>, %arg3: memref<12x12xf32, #tpu.memory_space<vmem>>, %arg4: memref<12x1xf32, #tpu.memory_space<vmem>>, %arg5: memref<1x12x256xf32, #tpu.memory_space<vmem>>) attributes {dimension_semantics = [#tpu.dimension_semantics<parallel>, #tpu.dimension_semantics<parallel>], iteration_bounds = array<i64: 2, 1>, scalar_prefetch = 0 : i64, scratch_operands = 0 : i64, tpu.core_type = #tpu.core_type<tc>, window_params = [{transform_indices = @transform_0, window_bounds = array<i64: 1, 12, 256>}, {pipeline_mode = #tpu.pipeline_mode<synchronous>, transform_indices = @transform_1, window_bounds = array<i64: 12, 12>}, {pipeline_mode = #tpu.pipeline_mode<synchronous>, transform_indices = @transform_2, window_bounds = array<i64: 12, 1>}, {transform_indices = @transform_3, window_bounds = array<i64: 1, 12, 256>}]} {
    %c0 = arith.constant 0 : index
    %c0_0 = arith.constant 0 : index
    %0 = vector.load %arg3[%c0, %c0_0] : memref<12x12xf32, #tpu.memory_space<vmem>>, vector<12x12xf32>
    %c0_1 = arith.constant 0 : index
    %c0_2 = arith.constant 0 : index
    %c0_3 = arith.constant 0 : index
    %1 = vector.load %arg2[%c0_1, %c0_2, %c0_3] : memref<1x12x256xf32, #tpu.memory_space<vmem>>, vector<1x12x256xf32>
    %2 = vector.shape_cast %1 : vector<1x12x256xf32> to vector<12x256xf32>
    %cst = arith.constant dense<0.000000e+00> : vector<12x256xf32>
    %3 = tpu.matmul %0, %2, %cst {dimension_numbers = #tpu.dot_dimension_numbers<[1], [0], [0], [1], [0, 0, 1, 1], [], []>} : vector<12x12xf32>, vector<12x256xf32>, vector<12x256xf32> -> vector<12x256xf32>
    %c0_4 = arith.constant 0 : index
    %c0_5 = arith.constant 0 : index
    %4 = vector.load %arg4[%c0_4, %c0_5] : memref<12x1xf32, #tpu.memory_space<vmem>>, vector<12x1xf32>
    %5 = vector.broadcast %4 : vector<12x1xf32> to vector<12x256xf32>
    %6 = arith.addf %3, %5 : vector<12x256xf32>
    %c0_6 = arith.constant 0 : index
    %c0_7 = arith.constant 0 : index
    %c0_8 = arith.constant 0 : index
    %7 = vector.load %arg5[%c0_6, %c0_7, %c0_8] : memref<1x12x256xf32, #tpu.memory_space<vmem>>, vector<1x12x256xf32>
    %8 = vector.shape_cast %7 : vector<1x12x256xf32> to vector<12x256xf32>
    %9 = vector.shape_cast %6 : vector<12x256xf32> to vector<1x12x256xf32>
    tpu.vector_store %arg5[%c0_6, %c0_7, %c0_8], %9 {strides = array<i32>} : memref<1x12x256xf32, #tpu.memory_space<vmem>>, vector<1x12x256xf32>,
    return
  }
  func.func @transform_0(%arg0: i32, %arg1: i32) -> (i32, i32, i32) {
    %c0_i32 = arith.constant 0 : i32
    %c0_i32_0 = arith.constant 0 : i32
    return %arg0, %c0_i32, %arg1 : i32, i32, i32
  }
  func.func @transform_1(%arg0: i32, %arg1: i32) -> (i32, i32) {
    %c0_i32 = arith.constant 0 : i32
    %c0_i32_0 = arith.constant 0 : i32
    %c0_i32_1 = arith.constant 0 : i32
    return %c0_i32, %c0_i32_0 : i32, i32
  }
  func.func @transform_2(%arg0: i32, %arg1: i32) -> (i32, i32) {
    %c0_i32 = arith.constant 0 : i32
    %c0_i32_0 = arith.constant 0 : i32
    %c0_i32_1 = arith.constant 0 : i32
    return %c0_i32, %c0_i32_0 : i32, i32
  }
  func.func @transform_3(%arg0: i32, %arg1: i32) -> (i32, i32, i32) {
    %c0_i32 = arith.constant 0 : i32
    %c0_i32_0 = arith.constant 0 : i32
    return %arg0, %c0_i32, %arg1 : i32, i32, i32
  }
}

</mosaic_0001>

<bundles_post_ra>
// kernel: mul.54
= control target key start
LH: loop header
LB: loop body
LE: loop exit
PB: predicated region body
PF: predicated region fallthrough
CT: control target
= control target key end

     0   :  { %vm8_vm0 = vcmask 64512   ;;  %s42_s0 = inlined_call_operand.vmem [shape: f32[16], index: 0, kind: input, shape index: {}]   ;;  %s43_s1 = inlined_call_operand.vmem [shape: f32[2,8], index: 1, kind: output, shape index: {}]  }
   0x1   :  { %v5_v0 = vld [vmem:[%s42_s0] sm:$0x1]  ;;  %s25_s0 = smov 120  }
   0x2   :  { %6 = vst [vmem:[#allocation1] sm:$0x1] %v5_v0 }
   0x9   :  { %v10_v1 = vld [vmem:[#allocation1] sm:$0x1]  }
   0xa   :  { %v7_v2 = vld [vmem:[#allocation1] sm:$0x1]   ;;  %11 = vrot.lane.b32.xlu0 %v10_v1, %s25_s0 }
   0xb   :  { %9 = vst.msk [vmem:[#allocation0] sm:$0x1] %vm8_vm0, %v7_v2  }
  0x7c   :  { %v12_v3 = vpop.permute.xlu0 %11  }
  0x7d   :  { %15 = vst.msk [vmem:[#allocation0 + $0x1] sm:$0x1] %vm8_vm0, %v12_v3  }
  0x84   :  { %v20_v4 = vld [vmem:[#allocation0] sm:$0x3] }
  0x85   :  { %23 = vst [vmem:[%s43_s1] sm:$0x3] %v20_v4 }

// kernel: iternorm_sigma_forward.2
= control target key start
LH: loop header
LB: loop body
LE: loop exit
PB: predicated region body
PF: predicated region fallthrough
CT: control target
= control target key end

     0   :  { %s507_s9 = smov 0   ;;  %s509_s10 = smov 0   ;;  %s565_s0 = inlined_call_operand.vmem [shape: f32[2,12,256], index: 0, kind: input, shape index: {}]   ;;  %s566_s1 = inlined_call_operand.vmem [shape: f32[2,12,12], index: 1, kind: output, shape index: {0}]   ;;  %s567_s2 = inlined_call_operand.vmem [shape: f32[2,12,1], index: 2, kind: output, shape index: {1}]  }
   0x1   :  { %s511_s11 = smov 0  }
   0x2 LB: > { %s32_s12 = sadd.s32 1, %s485_s10  ;;  %p426_p0 = scmp.ge.s32.totalorder %s489_s11, 1  ;;  %s489_s11 = sphi %s511_s11, %s13_s11   ;;  %s485_s10 = sphi %s509_s10, %s569_s10   ;;  %s481_s9 = sphi %s507_s9, %s568_s9  }
   0x3   : > { %p34_p1 = scmp.ge.s32.totalorder %s32_s12, 2  ;;  %p145_p2 = scmp.lt.s32.totalorder %s489_s11, 3 }
   0x5   : > { %s571_s12 = smov (%p34_p1, %s32_s12), 0  ;;  %p146_p3 = pnand %p426_p0, %p145_p2 }
   0x6   : > { %p179_p4 = scmp.lt.s32.totalorder (!%p146_p3), %s481_s9, 1 }
   0x7   : > { %149 = sbr.rel (%p146_p3) target bundleno = 221 (0xdd), region = 24 }
   0xc   : > { %s573_s9 = smov (!%p179_p4, %s481_s9), 1  ;;  %vm209_vm0 = vcmask 7168   ;;  %vm305_vm1 = vcmask 1043456   ;;  %v491_v3 = vmov 0.0   ;;  %vm211_vm2 = vcmask 3072  }
   0xd   : > { %s435_s13 = sshll.u32 %s573_s9, 5  ;;  %s436_s14 = sshll.u32 %s573_s9, 4  ;;  %vm205_vm3 = vcmask 97280   ;;  %vm207_vm4 = vcmask 93184  }
   0xe   : > { %s186_s17 = scalar_lea.vmem %s565_s0, %s435_s13  ;;  %s537_s20 = scalar_lea.vmem %s567_s2, %s436_s14 }
   0xf   : > { %v216_v0 = vld [vmem:[%s186_s17 + $0x18] sm:$0xf]  ;;  %v215_v1 = vld [vmem:[%s186_s17 + $0x10] sm:$0xf]  ;;  %v214_v2 = vld [vmem:[%s186_s17 + $0x8] sm:$0xff]  ;;  %210 = vst.msk [vmem:[%s537_s20] sm:$0xff] %vm209_vm0, %v491_v3  ;;  %s193_s23 = scalar_lea.vmem %s566_s1, %s436_s14 }
  0x10   : > { %247 = vmatprep.subr.mxu0 %v216_v0  ;;  %438 = vmatprep.subr.mxu1 %v216_v0  ;;  %v213_v4 = vld [vmem:[%s186_s17] sm:$0xff]  ;;  %v306_v6 = vsel %vm305_vm1, %v215_v1, 0.0  ;;  %v307_v7 = vsel %vm305_vm1, %v216_v0, 0.0  ;;  %212 = vst.msk [vmem:[%s537_s20 + $0x8] sm:$0xf] %vm211_vm2, %v491_v3 }
  0x11   : > { %248 = vmatpush1.xpose.msra.mxu0 %v215_v1  ;;  %440 = vmatpush1.xpose.msra.mxu1 %v215_v1  ;;  %v302_v5 = vadd.f32 %v214_v2, %v213_v4  ;;  %v308_v8 = vadd.f32 %v307_v7, %v306_v6  ;;  %206 = vst.msk [vmem:[%s193_s23] sm:$0xff] %vm205_vm3, %v491_v3 }
  0x12   : > { %249 = vmatprep.subr.mxu0 %v214_v2  ;;  %439 = vmatprep.subr.mxu1 %v214_v2  ;;  %208 = vst.msk [vmem:[%s193_s23 + $0x8] sm:$0xf] %vm207_vm4, %v491_v3 }
  0x13   : > { %283 = vmatprep.mubr.f32.mxu0 %v214_v2  ;;  %288 = vmatprep.mubr.f32.mxu1 %v216_v0 }
  0x14   : > { %303 = vadd.xlane.f32.xlu0 %v302_v5 }
  0x15   : > { %250 = vmatpush1.xpose.msra.mxu0 %v213_v4  ;;  %441 = vmatpush1.xpose.msra.mxu1 %v213_v4 }
  0x16   : > { %v300_v9 = vld [vmem:[%s537_s20] sm:$0xff] }
  0x17   : > { %v301_v12 = vld [vmem:[%s537_s20 + $0x8] sm:$0xf] }
  0x18   : > { %284 = vmatmul.mubr.f32.vlgmr.msra.gmra.mxu0 %v213_v4  ;;  %289 = vmatmul.mubr.f32.vlgmr.msra.gmra.mxu1 %v215_v1  ;;  %v217_v15 = vld [vmem:[%s193_s23] sm:$0xff] }
  0x19   : > { %309 = vadd.xlane.f32.xlu0 %v308_v8  ;;  %v218_v16 = vld [vmem:[%s193_s23 + $0x8] sm:$0xf] }
  0x9d   : > { %v304_v10 = vpop.xlane.xlu0 %303 }
  0x9e   : > { %v311_v11 = vadd.f32 %v304_v10, %v300_v9 }
  0xa0   : > { %314 = vst.msk [vmem:[%s537_s20] sm:$0xff] %vm209_vm0, %v311_v11 }
  0xa2   : > { %v310_v13 = vpop.xlane.xlu0 %309 }
  0xa3   : > { %v312_v14 = vadd.f32 %v310_v13, %v301_v12 }
  0xa5   : > { %316 = vst.msk [vmem:[%s537_s20 + $0x8] sm:$0xf] %vm211_vm2, %v312_v14 }
  0xd8   : > { %v285_v17 = vpop.f32.mrf.mxu0  ;;  %v290_v18 = vpop.f32.mrf.mxu1 }
  0xd9   : > { %v294_v19 = vadd.f32 %v285_v17, %v217_v15  ;;  %v295_v20 = vadd.f32 %v290_v18, %v218_v16 }
  0xda   : > { %v287_v21 = vpop.f32.mrf.mxu0  ;;  %v292_v22 = vpop.f32.mrf.mxu1 }
  0xdb   : > { %297 = vst.msk [vmem:[%s193_s23] sm:$0xff] %vm205_vm3, %v294_v19 }
  0xdc   : > { %299 = vst.msk [vmem:[%s193_s23 + $0x8] sm:$0xf] %vm207_vm4, %v295_v20 }
  0xdd PF: > { %s13_s11 = sadd.s32 1, %s489_s11   ;;  %s568_s9 = smov %s485_s10 }
  0xde   : > { %p10_p5 = scmp.ge.s32.totalorder %s13_s11, 4   ;;  %s569_s10 = smov %s571_s12 }
  0xe0   :  { %12 = sbr.rel (!%p10_p5) target bundleno = 2 (0x2), region = 70 }

// kernel: iternorm_sigma_forward.3
= control target key start
LH: loop header
LB: loop body
LE: loop exit
PB: predicated region body
PF: predicated region fallthrough
CT: control target
= control target key end

     0   :  { %s504_s12 = smov 0   ;;  %s506_s13 = smov 0   ;;  %s552_s0 = inlined_call_operand.vmem [shape: f32[2,12,256], index: 0, kind: input, shape index: {}]   ;;  %s553_s1 = inlined_call_operand.vmem [shape: f32[12,12], index: 1, kind: input, shape index: {}]   ;;  %s554_s2 = inlined_call_operand.vmem [shape: f32[12,1], index: 2, kind: input, shape index: {}]   ;;  %s555_s3 = inlined_call_operand.vmem [shape: f32[2,12,256], index: 3, kind: output, shape index: {}]  }
   0x1   :  { %s508_s14 = smov 0  }
   0x2 LB: > { %s25_s15 = sadd.s32 1, %s476_s13  ;;  %p414_p0 = scmp.ge.s32.totalorder %s480_s14, 1  ;;  %s480_s14 = sphi %s508_s14, %s13_s14   ;;  %s476_s13 = sphi %s506_s13, %s557_s13   ;;  %s472_s12 = sphi %s504_s12, %s556_s12  }
   0x3   : > { %p27_p1 = scmp.ge.s32.totalorder %s25_s15, 2  ;;  %p158_p2 = scmp.lt.s32.totalorder %s480_s14, 3 }
   0x5   : > { %s559_s15 = smov (%p27_p1, %s25_s15), 0  ;;  %p159_p3 = pnand %p414_p0, %p158_p2 }
   0x6   : > { %p191_p4 = scmp.lt.s32.totalorder (!%p159_p3), %s472_s12, 1 }
   0x7   : > { %162 = sbr.rel (%p159_p3) target bundleno = 218 (0xda), region = 32 }
   0xc   : > { %v482_v0 = vmov 0.0   ;;  %v216_v1 = vld [vmem:[%s554_s2] sm:$0xff]  ;;  %s561_s12 = smov (!%p191_p4, %s472_s12), 1  ;;  %v483_v2 = vmov 0   ;;  %vm235_vm0 = vcmask 1043456   ;;  %vm228_vm1 = vcmask 97280  }
   0xd   : > { %306 = vmatprep.mubr.f32.mxu0 %v482_v0  ;;  %312 = vmatprep.mubr.f32.mxu1 %v482_v0  ;;  %s425_s18 = sshll.u32 %s561_s12, 5  ;;  %v210_v7 = vld [vmem:[%s553_s1] sm:$0xff]  ;;  %v211_v8 = vld [vmem:[%s553_s1 + $0x8] sm:$0xf] }
   0xe   : > { %457 = vset.pattern.permute.xlu0 %v483_v2  ;;  %s198_s21 = scalar_lea.vmem %s552_s0, %s425_s18  ;;  %v217_v9 = vld [vmem:[%s554_s2 + $0x8] sm:$0xf]  ;;  %s208_s30 = scalar_lea.vmem %s555_s3, %s425_s18 }
   0xf   : > { %220 = vperm.xlu0 %457, %v216_v1   ;;  %v215_v3 = vld [vmem:[%s198_s21 + $0x18] sm:$0xf]  ;;  %v214_v4 = vld [vmem:[%s198_s21 + $0x10] sm:$0xf]  ;;  %v213_v5 = vld [vmem:[%s198_s21 + $0x8] sm:$0xff] }
  0x10   : > { %419 = vmatprep.subr.msk.mxu0 %vm235_vm0, %v215_v3  ;;  %427 = vmatprep.subr.msk.mxu1 %vm235_vm0, %v215_v3  ;;  %v212_v6 = vld [vmem:[%s198_s21] sm:$0xff] }
  0x11   : > { %420 = vmatpush1.msk.msra.mxu0 %vm235_vm0, %v214_v4  ;;  %429 = vmatpush1.msk.msra.mxu1 %vm235_vm0, %v214_v4 }
  0x12   : > { %272 = vmatprep.subr.mxu0 %v213_v5  ;;  %428 = vmatprep.subr.mxu1 %v213_v5 }
  0x13   : > { %273 = vmatpush1.msra.mxu0 %v212_v6  ;;  %430 = vmatpush1.msra.mxu1 %v212_v6 }
  0x14   : > { %421 = vmatmul.mubr.msk.f32.vlgmr.msra.gmra.mxu0 %vm228_vm1, %v210_v7  ;;  %422 = vmatmul.mubr.msk.f32.vlgmr.msra.gmra.mxu1 %vm228_vm1, %v211_v8 }
  0x15   : > { %225 = vperm.xlu0 %457, %v217_v9  }
  0x8a   : > { %v221_v10 = vpop.permute.xlu0 %220 }
  0x90   : > { %v226_v11 = vpop.permute.xlu0 %225 }
  0xd4   : > { %v308_v12 = vpop.f32.mrf.mxu0  ;;  %v314_v13 = vpop.f32.mrf.mxu1 }
  0xd5   : > { %v309_v14 = vadd.f32 %v308_v12, %v221_v10  ;;  %v315_v15 = vadd.f32 %v314_v13, %v226_v11 }
  0xd6   : > { %v310_v16 = vpop.f32.mrf.mxu0  ;;  %v316_v17 = vpop.f32.mrf.mxu1 }
  0xd7   : > { %319 = vst [vmem:[%s208_s30] sm:$0xff] %v309_v14  ;;  %321 = vst [vmem:[%s208_s30 + $0x10] sm:$0xf] %v315_v15  ;;  %v311_v18 = vadd.f32 %v310_v16, %v221_v10  ;;  %v317_v19 = vadd.f32 %v316_v17, %v226_v11 }
  0xd9   : > { %320 = vst [vmem:[%s208_s30 + $0x8] sm:$0xff] %v311_v18  ;;  %322 = vst [vmem:[%s208_s30 + $0x18] sm:$0xf] %v317_v19 }
  0xda PF: > { %s13_s14 = sadd.s32 1, %s480_s14   ;;  %s556_s12 = smov %s476_s13 }
  0xdb   : > { %p10_p5 = scmp.ge.s32.totalorder %s13_s14, 4   ;;  %s557_s13 = smov %s559_s15 }
  0xdd   :  { %12 = sbr.rel (!%p10_p5) target bundleno = 2 (0x2), region = 62 }

</bundles_post_ra>
